<compile_context>
chip_gen: v7x
topology: tpu7x:2x2x1
jax: 0.10.0
libtpu: 0.0.40
codegen_flags: <defaults>
</compile_context>

<pallas_src>
import jax
import jax.numpy as jnp
from jax.experimental import pallas as pl
from jax.experimental.pallas import tpu as pltpu


def _round_up(x, m):
    return ((x + m - 1) // m) * m


def _actor_kernel(x_ref, w1_ref, b1_ref, w2_ref, b2_ref, o_ref):
    # Hidden layer: Linear + ReLU (MXU matmul, f32 accumulate).
    x = x_ref[...]
    h = jnp.dot(x, w1_ref[...], preferred_element_type=jnp.float32) + b1_ref[...]
    h = jnp.maximum(h, 0.0)

    # Actor head: keep the MXU pass lane-dense (N = 128), then slice down to
    # the narrow output slab.  b2 is pre-padded with -1e30 on unused action
    # lanes, so no explicit iota/where mask is needed before the softmax
    # (exp of the padded lanes underflows cleanly to 0).
    na_out = o_ref.shape[-1]
    logits = jnp.dot(h, w2_ref[...], preferred_element_type=jnp.float32)
    logits = logits[:, :na_out] + b2_ref[...]

    # Numerically stable softmax over dim=1 (last axis); reciprocal-multiply.
    m = jnp.max(logits, axis=-1, keepdims=True)
    e = jnp.exp(logits - m)
    denom = jnp.sum(e, axis=-1, keepdims=True)
    inv = pl.reciprocal(denom, approx=False)
    o_ref[...] = (e * inv).astype(o_ref.dtype)


def _choose_batch_tile(B):
    """Returns (tile_rows, padded_batch)."""
    b8 = _round_up(B, 8)
    if b8 <= 128:
        return b8, b8                                   # single grid step
    # Large batch: big tiles amortize the ~0.35us per-step overhead, but keep
    # at least 2 steps so the parallel axis can use both v7x TensorCores.
    tb = min(1024, _round_up((b8 + 1) // 2, 8))
    b_pad = _round_up(B, tb)
    return tb, b_pad


def make_actor_fn(w1, b1, w2, b2):
    """Pads the parameters ONCE and returns a jitted forward(x) closure."""
    n_state, hidden = w1.shape
    n_action = w2.shape[1]

    ns_pad = _round_up(max(n_state, 8), 8)              # 4   -> 8
    h_pad = _round_up(max(hidden, 128), 128)            # 100 -> 128
    na_mm = _round_up(max(n_action, 128), 128)          # MXU N (lane-dense)
    na_out = _round_up(n_action, 8)                     # narrow output slab

    # One-time padding (hoisted out of the per-call path).  Zero pads keep the
    # math identical; the unused action lanes of b2 get -1e30 so they vanish
    # in the softmax without any in-kernel masking.
    w1p = jnp.pad(w1, ((0, ns_pad - n_state), (0, h_pad - hidden)))
    b1p = jnp.pad(b1.reshape(1, hidden), ((0, 0), (0, h_pad - hidden)))
    w2p = jnp.pad(w2, ((0, h_pad - hidden), (0, na_mm - n_action)))
    b2p = jnp.pad(b2.reshape(1, n_action), ((0, 0), (0, na_out - n_action)),
                  constant_values=-1e30)

    @jax.jit
    def _forward(x, w1p, b1p, w2p, b2p):
        B, ns = x.shape
        tb, b_pad = _choose_batch_tile(B)
        if (b_pad, ns_pad) != (B, ns):
            x = jnp.pad(x, ((0, b_pad - B), (0, ns_pad - ns)))

        out = pl.pallas_call(
            _actor_kernel,
            out_shape=jax.ShapeDtypeStruct((b_pad, na_out), jnp.float32),
            grid_spec=pltpu.PrefetchScalarGridSpec(
                num_scalar_prefetch=0,
                grid=(b_pad // tb,),
                in_specs=[
                    pl.BlockSpec((tb, ns_pad), lambda i: (i, 0)),      # x tile
                    pl.BlockSpec((ns_pad, h_pad), lambda i: (0, 0)),   # w1 resident
                    pl.BlockSpec((1, h_pad), lambda i: (0, 0)),        # b1 resident
                    pl.BlockSpec((h_pad, na_mm), lambda i: (0, 0)),    # w2 resident
                    pl.BlockSpec((1, na_out), lambda i: (0, 0)),       # b2 resident
                ],
                out_specs=pl.BlockSpec((tb, na_out), lambda i: (i, 0)),
            ),
            compiler_params=pltpu.CompilerParams(
                dimension_semantics=("parallel",)),
        )(x, w1p, b1p, w2p, b2p)

        return out[:B, :n_action]

    return lambda x: _forward(x, w1p, b1p, w2p, b2p)


def init_params(key, n_state, n_action, hidden=100):
    # PyTorch default Linear init: U(-1/sqrt(fan_in), 1/sqrt(fan_in)).
    k1, k2, k3, k4 = jax.random.split(key, 4)
    lim1 = 1.0 / jnp.sqrt(n_state)
    lim2 = 1.0 / jnp.sqrt(hidden)
    w1 = jax.random.uniform(k1, (n_state, hidden), jnp.float32, -lim1, lim1)
    b1 = jax.random.uniform(k2, (1, hidden), jnp.float32, -lim1, lim1)
    w2 = jax.random.uniform(k3, (hidden, n_action), jnp.float32, -lim2, lim2)
    b2 = jax.random.uniform(k4, (1, n_action), jnp.float32, -lim2, lim2)
    return w1, b1, w2, b2


def _reference(x, w1, b1, w2, b2):
    h = jnp.maximum(x @ w1 + b1, 0.0)
    return jax.nn.softmax(h @ w2 + b2, axis=1)


if __name__ == "__main__":
    key = jax.random.PRNGKey(0)
    kx, kp, kx2 = jax.random.split(key, 3)

    # CartPole-like shapes: batch=8, n_state=4, n_action=2
    B, n_state, n_action = 8, 4, 2
    x = jax.random.normal(kx, (B, n_state), jnp.float32)
    w1, b1, w2, b2 = init_params(kp, n_state, n_action)

    actor = make_actor_fn(w1, b1, w2, b2)   # params padded once here

    out = jax.block_until_ready(actor(x))
    ref = _reference(x, w1, b1, w2, b2)
    assert out.shape == (B, n_action)
    assert jnp.allclose(out, ref, atol=1e-5, rtol=1e-5)
    assert jnp.allclose(jnp.sum(out, axis=1), 1.0, atol=1e-5)

    # Exercise the batched / multi-grid-step path (>= 2 parallel steps).
    B2 = 300
    x2 = jax.random.normal(kx2, (B2, n_state), jnp.float32)
    out2 = jax.block_until_ready(actor(x2))
    ref2 = _reference(x2, w1, b1, w2, b2)
    assert out2.shape == (B2, n_action)
    assert jnp.allclose(out2, ref2, atol=1e-5, rtol=1e-5)
    assert jnp.allclose(jnp.sum(out2, axis=1), 1.0, atol=1e-5)

    print("KERNEL_OK")
</pallas_src>

<mosaic_0001>
module attributes {stable_mosaic.version = 11 : i64} {
  func.func @_actor_kernel(%arg0: i32, %arg1: memref<8x8xf32, #tpu.memory_space<vmem>>, %arg2: memref<8x128xf32, #tpu.memory_space<vmem>>, %arg3: memref<1x128xf32, #tpu.memory_space<vmem>>, %arg4: memref<128x128xf32, #tpu.memory_space<vmem>>, %arg5: memref<1x8xf32, #tpu.memory_space<vmem>>, %arg6: memref<8x8xf32, #tpu.memory_space<vmem>>) attributes {dimension_semantics = [#tpu.dimension_semantics<parallel>], iteration_bounds = array<i64: 1>, scalar_prefetch = 0 : i64, scratch_operands = 0 : i64, tpu.core_type = #tpu.core_type<tc>, window_params = [{transform_indices = @transform_0, window_bounds = array<i64: 8, 8>}, {pipeline_mode = #tpu.pipeline_mode<synchronous>, transform_indices = @transform_1, window_bounds = array<i64: 8, 128>}, {pipeline_mode = #tpu.pipeline_mode<synchronous>, transform_indices = @transform_2, window_bounds = array<i64: 1, 128>}, {pipeline_mode = #tpu.pipeline_mode<synchronous>, transform_indices = @transform_3, window_bounds = array<i64: 128, 128>}, {pipeline_mode = #tpu.pipeline_mode<synchronous>, transform_indices = @transform_4, window_bounds = array<i64: 1, 8>}, {transform_indices = @transform_5, window_bounds = array<i64: 8, 8>}]} {
    %c0 = arith.constant 0 : index
    %c0_0 = arith.constant 0 : index
    %0 = vector.load %arg1[%c0, %c0_0] : memref<8x8xf32, #tpu.memory_space<vmem>>, vector<8x8xf32>
    %c0_1 = arith.constant 0 : index
    %c0_2 = arith.constant 0 : index
    %1 = vector.load %arg2[%c0_1, %c0_2] : memref<8x128xf32, #tpu.memory_space<vmem>>, vector<8x128xf32>
    %cst = arith.constant dense<0.000000e+00> : vector<8x128xf32>
    %2 = tpu.matmul %0, %1, %cst {dimension_numbers = #tpu.dot_dimension_numbers<[1], [0], [0], [1], [0, 0, 1, 1], [], []>} : vector<8x8xf32>, vector<8x128xf32>, vector<8x128xf32> -> vector<8x128xf32>
    %c0_3 = arith.constant 0 : index
    %c0_4 = arith.constant 0 : index
    %3 = vector.load %arg3[%c0_3, %c0_4] : memref<1x128xf32, #tpu.memory_space<vmem>>, vector<1x128xf32>
    %4 = vector.broadcast %3 : vector<1x128xf32> to vector<8x128xf32>
    %5 = arith.addf %2, %4 : vector<8x128xf32>
    %cst_5 = arith.constant 0.000000e+00 : f32
    %6 = vector.broadcast %cst_5 : f32 to vector<8x128xf32>
    %7 = arith.maximumf %5, %6 : vector<8x128xf32>
    %c0_6 = arith.constant 0 : index
    %c0_7 = arith.constant 0 : index
    %8 = vector.load %arg4[%c0_6, %c0_7] : memref<128x128xf32, #tpu.memory_space<vmem>>, vector<128x128xf32>
    %cst_8 = arith.constant dense<0.000000e+00> : vector<8x128xf32>
    %9 = tpu.matmul %7, %8, %cst_8 {dimension_numbers = #tpu.dot_dimension_numbers<[1], [0], [0], [1], [0, 0, 1, 1], [], []>} : vector<8x128xf32>, vector<128x128xf32>, vector<8x128xf32> -> vector<8x128xf32>
    %10 = vector.extract_strided_slice %9 {offsets = [0, 0], sizes = [8, 8], strides = [1, 1]} : vector<8x128xf32> to vector<8x8xf32>
    %c0_9 = arith.constant 0 : index
    %c0_10 = arith.constant 0 : index
    %11 = vector.load %arg5[%c0_9, %c0_10] : memref<1x8xf32, #tpu.memory_space<vmem>>, vector<1x8xf32>
    %12 = vector.broadcast %11 : vector<1x8xf32> to vector<8x8xf32>
    %13 = arith.addf %10, %12 : vector<8x8xf32>
    %cst_11 = arith.constant dense<0xFF800000> : vector<8xf32>
    %14 = vector.multi_reduction <maximumf>, %13, %cst_11 [1] : vector<8x8xf32> to vector<8xf32>
    %15 = vector.shape_cast %14 : vector<8xf32> to vector<8x1xf32>
    %16 = vector.broadcast %15 : vector<8x1xf32> to vector<8x8xf32>
    %17 = arith.subf %13, %16 : vector<8x8xf32>
    %18 = math.exp %17 : vector<8x8xf32>
    %cst_12 = arith.constant dense<0.000000e+00> : vector<8xf32>
    %19 = vector.multi_reduction <add>, %18, %cst_12 [1] : vector<8x8xf32> to vector<8xf32>
    %20 = vector.shape_cast %19 : vector<8xf32> to vector<8x1xf32>
    %21 = tpu.reciprocal %20 : vector<8x1xf32> -> vector<8x1xf32>
    %22 = vector.broadcast %21 : vector<8x1xf32> to vector<8x8xf32>
    %23 = arith.mulf %18, %22 : vector<8x8xf32>
    %c0_13 = arith.constant 0 : index
    %c0_14 = arith.constant 0 : index
    %24 = vector.load %arg6[%c0_13, %c0_14] : memref<8x8xf32, #tpu.memory_space<vmem>>, vector<8x8xf32>
    tpu.vector_store %arg6[%c0_13, %c0_14], %23 {strides = array<i32>} : memref<8x8xf32, #tpu.memory_space<vmem>>, vector<8x8xf32>,
    return
  }
  func.func @transform_0(%arg0: i32) -> (i32, i32) {
    %c0_i32 = arith.constant 0 : i32
    %c0_i32_0 = arith.constant 0 : i32
    return %arg0, %c0_i32 : i32, i32
  }
  func.func @transform_1(%arg0: i32) -> (i32, i32) {
    %c0_i32 = arith.constant 0 : i32
    %c0_i32_0 = arith.constant 0 : i32
    %c0_i32_1 = arith.constant 0 : i32
    return %c0_i32, %c0_i32_0 : i32, i32
  }
  func.func @transform_2(%arg0: i32) -> (i32, i32) {
    %c0_i32 = arith.constant 0 : i32
    %c0_i32_0 = arith.constant 0 : i32
    %c0_i32_1 = arith.constant 0 : i32
    return %c0_i32, %c0_i32_0 : i32, i32
  }
  func.func @transform_3(%arg0: i32) -> (i32, i32) {
    %c0_i32 = arith.constant 0 : i32
    %c0_i32_0 = arith.constant 0 : i32
    %c0_i32_1 = arith.constant 0 : i32
    return %c0_i32, %c0_i32_0 : i32, i32
  }
  func.func @transform_4(%arg0: i32) -> (i32, i32) {
    %c0_i32 = arith.constant 0 : i32
    %c0_i32_0 = arith.constant 0 : i32
    %c0_i32_1 = arith.constant 0 : i32
    return %c0_i32, %c0_i32_0 : i32, i32
  }
  func.func @transform_5(%arg0: i32) -> (i32, i32) {
    %c0_i32 = arith.constant 0 : i32
    %c0_i32_0 = arith.constant 0 : i32
    return %arg0, %c0_i32 : i32, i32
  }
}

</mosaic_0001>

<bundles_post_ra>
// kernel: _forward.1
= control target key start
LH: loop header
LB: loop body
LE: loop exit
PB: predicated region body
PF: predicated region fallthrough
CT: control target
= control target key end

     0   :  { %10 = vsyncpa [#allocation3], 0  ;;  %s349_s18 = smov [#allocation2]   ;;  %s416_s0 = inlined_call_operand.vmem [shape: f32[8,8], index: 0, kind: input, shape index: {}]   ;;  %s417_s1 = inlined_call_operand.vmem [shape: f32[8,128], index: 1, kind: input, shape index: {}]   ;;  %s418_s2 = inlined_call_operand.vmem [shape: f32[1,128], index: 2, kind: input, shape index: {}]   ;;  %s419_s3 = inlined_call_operand.hbm [shape: f32[128,128], index: 3, kind: input, shape index: {}]   ;;  %s420_s4 = inlined_call_operand.vmem [shape: f32[1,8], index: 4, kind: input, shape index: {}]   ;;  %s421_s5 = inlined_call_operand.vmem [shape: f32[8,8], index: 5, kind: output, shape index: {}]  }
   0x1   :  { %s22_s19 = sshll.u32 %s349_s18, 4  ;;  %s325_s22 = scalar_lea.hbm %s419_s3, 2048  ;;  %s23_s19 = int_to_ptr.vmem [resolvable:$true] %s22_s19 }
   0x2   :  { %p326_p0 = scmp.ne.s32.totalorder %s419_s3, %s325_s22  ;;  %p329_p1 = scmp.lt.u32.totalorder %s325_s22, %s419_s3 }
   0x4   :  { %p331_p2 = pnand %p329_p1, %p326_p0 }
   0x6   :  { %334 = shalt.err (!%p331_p2)
}
   0x7   :  { %s335_s27 = scalar_lea.vmem %s23_s19, 2048  ;;  %p340_p4 = scmp.lt.s32.totalorder %s23_s19, %s23_s19 }
   0x8   :  { %p336_p3 = scmp.ne.s32.totalorder %s23_s19, %s335_s27  ;;  %p341_p5 = scmp.lt.s32.totalorder %s335_s27, %s335_s27 }
   0xa   :  { %p342_p6 = por %p341_p5, %p340_p4 }
   0xc   :  { %p343_p7 = pnand %p342_p6, %p336_p3 }
   0xe   :  { %346 = shalt.err (!%p343_p7)
}
   0xf   :  { %s350_s28 = smov 128   ;;  %s351_s29 = smov 8  }
  0x10   :  { %28 = dma.hbm_to_vmem [thread:$0]  %s419_s3, 2048, %s23_s19, [#allocation3], %s350_s28, %s350_s28, %s351_s29  }
  0x11   :  { %347 = dma.done.wait [#allocation3], 2048  }
  0x12   :  { %348 = vsyncadd [#allocation3], 4294965248  ;;  %v352_v0 = vmov 0.0   ;;  %vm353_vm0 = vmmov 0   ;;  %v354_v1 = vmov 0.0|0.0   ;;  %vm43_vm1 = vcmask 64512  }
  0x13   :  { %251 = vmatprep.subr.mxu0 %v352_v0  ;;  %253 = vmatprep.mubr.msk.f32.mxu0 %vm353_vm0, %v352_v0  ;;  %v35_v2 = vld [vmem:[%s417_s1] sm:$0xff]  ;;  %v119_v5 = vld [vmem:[#allocation2 + $0x8] sm:$0xff]  ;;  %v120_v6 = vld [vmem:[#allocation2 + $0x10] sm:$0xff] }
  0x14   :  { %291 = vmatprep.subr.bf16.mxu1 %v354_v1  ;;  %288 = vmatprep.mubr.msk.f32.mxu1 %vm353_vm0, %v352_v0  ;;  %v34_v3 = vld [vmem:[%s416_s0] sm:$0xff]  ;;  %v121_v7 = vld [vmem:[#allocation2 + $0x18] sm:$0xff]  ;;  %v123_v11 = vld [vmem:[#allocation2 + $0x28] sm:$0xff] }
  0x15   :  { %v118_v4 = vld [vmem:[#allocation2] sm:$0xff]  ;;  %252 = vmatpush3.msra.mxu0 %v35_v2  ;;  %v295_v9 = vpack.c.bf16 %v121_v7, %v120_v6  ;;  %v124_v13 = vld [vmem:[#allocation2 + $0x30] sm:$0xff]  ;;  %v125_v14 = vld [vmem:[#allocation2 + $0x38] sm:$0xff] }
  0x16   :  { %254 = vmatmul.mubr.msk.f32.vlgmr.msra.gmra.mrb[0].mxu0 %vm43_vm1, %v34_v3  ;;  %v292_v8 = vpack.c.bf16 %v119_v5, %v118_v4  ;;  %v122_v10 = vld [vmem:[#allocation2 + $0x20] sm:$0xff]  ;;  %v301_v15 = vpack.c.bf16 %v125_v14, %v124_v13  ;;  %v127_v17 = vld [vmem:[#allocation2 + $0x48] sm:$0xff]  ;;  %v128_v19 = vld [vmem:[#allocation2 + $0x50] sm:$0xff] }
  0x17   :  { %v298_v12 = vpack.c.bf16 %v123_v11, %v122_v10  ;;  %v126_v16 = vld [vmem:[#allocation2 + $0x40] sm:$0xff]  ;;  %v129_v20 = vld [vmem:[#allocation2 + $0x58] sm:$0xff]  ;;  %v131_v23 = vld [vmem:[#allocation2 + $0x68] sm:$0xff] }
  0x18   :  { %293 = vmatpush3.bf16.msra.mxu1 %v292_v8  ;;  %v304_v18 = vpack.c.bf16 %v127_v17, %v126_v16  ;;  %v307_v21 = vpack.c.bf16 %v129_v20, %v128_v19  ;;  %v130_v22 = vld [vmem:[#allocation2 + $0x60] sm:$0xff]  ;;  %v132_v25 = vld [vmem:[#allocation2 + $0x70] sm:$0xff]  ;;  %v133_v26 = vld [vmem:[#allocation2 + $0x78] sm:$0xff] }
  0x19   :  { %294 = vmatprep.subr.bf16.mxu1 %v354_v1  ;;  %v310_v24 = vpack.c.bf16 %v131_v23, %v130_v22  ;;  %v313_v27 = vpack.c.bf16 %v133_v26, %v132_v25  ;;  %v229_v28 = vld [vmem:[%s418_s2] ss:$0 sm:$0xff] }
  0x1a   :  { %v231_v33 = vld [vmem:[%s420_s4] ss:$0 sm:$0xff] }
  0x1c   :  { %296 = vmatpush3.bf16.msra.mxu1 %v295_v9 }
  0x1d   :  { %297 = vmatprep.subr.bf16.mxu1 %v354_v1 }
  0x20   :  { %299 = vmatpush3.bf16.msra.mxu1 %v298_v12 }
  0x21   :  { %300 = vmatprep.subr.bf16.mxu1 %v354_v1 }
  0x24   :  { %302 = vmatpush3.bf16.msra.mxu1 %v301_v15 }
  0x25   :  { %303 = vmatprep.subr.bf16.mxu1 %v354_v1 }
  0x28   :  { %305 = vmatpush3.bf16.msra.mxu1 %v304_v18 }
  0x29   :  { %306 = vmatprep.subr.bf16.mxu1 %v354_v1 }
  0x2c   :  { %308 = vmatpush3.bf16.msra.mxu1 %v307_v21 }
  0x2d   :  { %309 = vmatprep.subr.bf16.mxu1 %v354_v1 }
  0x30   :  { %311 = vmatpush3.bf16.msra.mxu1 %v310_v24 }
  0x31   :  { %312 = vmatprep.subr.bf16.mxu1 %v354_v1 }
  0x34   :  { %314 = vmatpush3.bf16.msra.mxu1 %v313_v27 }
  0xe9   :  { %v113_v29 = vpop.f32.mrb[0].mxu0 }
  0xea   :  { %v114_v30 = vadd.f32 %v229_v28, %v113_v29  ;;  %v255_v31 = vpop.f32.mrb[1].mxu0 }
  0xec   :  { %v117_v32 = vmax.f32 %v114_v30, 0.0 }
  0xee   :  { %289 = vmatmul.mubr.f32.vlgmr.msra.gmra.mrb[0].mxu1 %v117_v32 }
 0x1c1   :  { %v200_v34 = vpop.f32.mrb[0].mxu1 }
 0x1c2   :  { %v211_v35 = vadd.f32 %v231_v33, %v200_v34  ;;  %v290_v36 = vpop.f32.mrb[1].mxu1 }
 0x1c4   :  { %v212_v37 = vsel %vm43_vm1, %v211_v35, -inf }
 0x1c5   :  { %213 = vmax.xlane.f32.xlu0 %v212_v37 }
 0x252   :  { %v214_v38 = vpop.xlane.xlu0 %213 }
 0x253   :  { %v215_v39 = vsub.f32 %v211_v35, %v214_v38 }
 0x255   :  { %v216_v40 = vmul.f32 1.442695, %v215_v39 }
 0x257   :  { %321 = vpow2.f32 %v216_v40 }
 0x261   :  { %v322_v41 = vpop.eup %321 }
 0x262   :  { %v218_v42 = vsel %vm43_vm1, %v322_v41, 0.0 }
 0x263   :  { %219 = vadd.xlane.f32.xlu0 %v218_v42 }
 0x2f0   :  { %v220_v43 = vpop.xlane.xlu0 %219 }
 0x2f1   :  { %323 = vrcp.f32 %v220_v43 }
 0x2fb   :  { %v324_v44 = vpop.eup %323 }
 0x2fc   :  { %v222_v45 = vmul.f32 %v324_v44, %v322_v41 }
 0x2fe   :  { %223 = vst.msk [vmem:[%s421_s5] sm:$0xff] %vm43_vm1, %v222_v45 }
 0x2ff   :  { %228 = vsyncpa [#allocation3], 1 }

</bundles_post_ra>
